<compile_context>
chip_gen: v6e
topology: v6e:2x2x1
jax: 0.10.0
libtpu: 0.0.40
codegen_flags: <defaults>
</compile_context>

<pallas_src>
import functools

import jax
import jax.numpy as jnp
from jax import lax
from jax.experimental import pallas as pl
from jax.experimental.pallas import tpu as pltpu

BN_EPS = 1e-5
_LANE = 128


def _round_up(n: int, m: int) -> int:
    return ((n + m - 1) // m) * m


# ---------------------------------------------------------------------------
# Kernel 1: streamed global-average-pool partial sums.
# grid = (G groups [parallel], tiles-per-group [arbitrary/reduction])
# ---------------------------------------------------------------------------
def _gap_kernel(x_ref, psum_ref, acc_ref, *, tile, tiles_per_group, hw, ragged):
    g = pl.program_id(0)
    t = pl.program_id(1)

    @pl.when(t == 0)
    def _init():
        acc_ref[...] = jnp.zeros_like(acc_ref)

    n_chunks = tile // _LANE
    if ragged:
        # Logical (unclamped) spatial offset of this block; lanes >= HW are
        # zeroed before the accumulate so OOB/garbage data never pollutes the sum.
        base = (g * tiles_per_group + t) * tile
        lane = lax.broadcasted_iota(jnp.int32, (1, 1, _LANE), 2)

    # Lane-resident accumulation: 128-lane static slices are free; the single
    # cross-lane reduce happens only in the per-group finalize below.
    part = None
    for k in range(n_chunks):
        chunk = x_ref[:, :, k * _LANE:(k + 1) * _LANE].astype(jnp.float32)
        if ragged:
            mask = (base + k * _LANE + lane) < hw
            chunk = jnp.where(mask, chunk, 0.0)
        part = chunk if part is None else part + chunk
    acc_ref[...] += part

    @pl.when(t == pl.num_programs(1) - 1)
    def _finalize():
        psum_ref[...] = jnp.sum(acc_ref[...], axis=-1)[None, :, :]   # (1, B, C)


# ---------------------------------------------------------------------------
# Kernel 2: epilogue — combine partial sums, fused linear, BN, weight-norm head.
# ---------------------------------------------------------------------------
def _head_kernel(psum_ref, wfT_ref, bf_ref, gamma_ref, beta_ref, whT_ref, bh_ref,
                 y_ref, f_ref, *, inv_hw):
    pooled = jnp.sum(psum_ref[...], axis=0) * inv_hw                 # (B, C) true mean

    # Fused backbone-linear + bottleneck-linear (pre-fused / pre-transposed).
    z = jnp.dot(pooled, wfT_ref[...],
                preferred_element_type=jnp.float32) + bf_ref[...]    # (B, D_pad)

    # BatchNorm1d, training mode: full-batch biased statistics.
    mu = jnp.mean(z, axis=0, keepdims=True)
    zc = z - mu
    var = jnp.mean(zc * zc, axis=0, keepdims=True)
    f = zc * lax.rsqrt(var + BN_EPS) * gamma_ref[...] + beta_ref[...]

    # Weight-normalized head; W = g*v/||v|| precomputed + pre-transposed.
    y = jnp.dot(f, whT_ref[...],
                preferred_element_type=jnp.float32) + bh_ref[...]    # (B, NC_pad)

    f_ref[...] = f.astype(f_ref.dtype)
    y_ref[...] = y.astype(y_ref.dtype)


def image_classifier_wn(x_nchw, params, *, target_block_bytes=2 * 1024 * 1024,
                        num_core_splits=2):
    """x_nchw: (B, C, H, W). Returns (y, f) exactly like the PyTorch module."""
    B, C, H, W = x_nchw.shape
    HW = H * W
    x3 = x_nchw.reshape(B, C, HW)              # stream in caller dtype (f32 or bf16)
    itemsize = x3.dtype.itemsize

    # ---- per-generation VMEM budget ----------------------------------------
    try:
        vmem_phys = int(pltpu.get_tpu_info().vmem_capacity_bytes)
    except Exception:
        vmem_phys = 64 * 1024 * 1024           # conservative: v7x per-core VMEM
    vmem_limit = int(vmem_phys * 0.8)          # leave compiler/scratch headroom
    stream_budget = int(vmem_limit * 0.7)      # for x double-buffers + accumulator

    # ---- spatial tile sized in bytes, lane-aligned --------------------------
    per_sp = B * C * itemsize                  # bytes per spatial element of the stream
    acc_bytes = B * C * _LANE * 4              # lane-resident f32 accumulator
    tile = max(_LANE, (target_block_bytes // per_sp) // _LANE * _LANE)
    tile = min(tile, _round_up(HW, _LANE), 64 * _LANE)   # cap unrolled chunk count
    fit = ((stream_budget - acc_bytes) // (2 * per_sp)) // _LANE * _LANE
    tile = int(min(tile, max(_LANE, fit)))
    if 2 * B * C * tile * itemsize + acc_bytes > stream_budget:
        # TODO(synk): add a channel-tiled 2-D grid for very large B*C backbones.
        raise ValueError("B*C too large for a single 128-lane spatial tile; "
                         "channel tiling needed")

    total_blocks = -(-HW // tile)
    G = max(1, min(int(num_core_splits), total_blocks))   # v7x dual-core split
    tpg = -(-total_blocks // G)                            # tiles per group
    ragged = (G * tpg * tile != HW)
    max_blk = total_blocks - 1

    gap = functools.partial(_gap_kernel, tile=tile, tiles_per_group=tpg,
                            hw=HW, ragged=ragged)

    psum = pl.pallas_call(
        gap,
        out_shape=jax.ShapeDtypeStruct((G, B, C), jnp.float32),
        grid_spec=pltpu.PrefetchScalarGridSpec(
            num_scalar_prefetch=0,
            grid=(G, tpg),
            in_specs=[pl.BlockSpec(
                (B, C, tile),
                # clamp so no block is fully out of bounds; logically-OOB tiles
                # are zeroed by the in-kernel lane mask
                lambda g, t: (0, 0, jnp.minimum(g * tpg + t, max_blk)))],
            out_specs=pl.BlockSpec((1, B, C), lambda g, t: (g, 0, 0)),
            scratch_shapes=[pltpu.VMEM((B, C, _LANE), jnp.float32)],
        ),
        compiler_params=pltpu.CompilerParams(
            dimension_semantics=("parallel", "arbitrary"),
            vmem_limit_bytes=vmem_limit,
        ),
    )(x3)

    # ---- wrapper-side weight precompute (data-independent) ------------------
    wb, bb = params["wb"], params["bb"]              # (Fb, C), (1, Fb)
    w1, b1 = params["w1"], params["b1"]              # (D, Fb), (1, D)
    gamma, beta = params["gamma"], params["beta"]    # (1, D), (1, D)
    v, g_mag, bh = params["v"], params["g"], params["bh"]  # (NC, D), (NC, 1), (1, NC)

    D = w1.shape[0]
    NC = v.shape[0]
    D_pad = _round_up(D, _LANE)
    NC_pad = _round_up(NC, _LANE)

    w_fused_T = (w1 @ wb).T                          # (C, D)
    b_fused = bb @ w1.T + b1                         # (1, D)
    row_norm = jnp.sqrt(jnp.sum(v * v, axis=1, keepdims=True))
    w_head_T = (g_mag * v / row_norm).T              # (D, NC)

    wfT = jnp.zeros((C, D_pad), jnp.float32).at[:, :D].set(w_fused_T)
    bf = jnp.zeros((1, D_pad), jnp.float32).at[:, :D].set(b_fused)
    gm = jnp.ones((1, D_pad), jnp.float32).at[:, :D].set(gamma)
    bt = jnp.zeros((1, D_pad), jnp.float32).at[:, :D].set(beta)
    whT = jnp.zeros((D_pad, NC_pad), jnp.float32).at[:D, :NC].set(w_head_T)
    bhp = jnp.zeros((1, NC_pad), jnp.float32).at[:, :NC].set(bh)

    head = functools.partial(_head_kernel, inv_hw=1.0 / float(HW))
    c2 = lambda i: (0, 0)
    c3 = lambda i: (0, 0, 0)

    y_p, f_p = pl.pallas_call(
        head,
        out_shape=(jax.ShapeDtypeStruct((B, NC_pad), jnp.float32),
                   jax.ShapeDtypeStruct((B, D_pad), jnp.float32)),
        grid_spec=pltpu.PrefetchScalarGridSpec(
            num_scalar_prefetch=0,
            grid=(1,),
            in_specs=[
                pl.BlockSpec((G, B, C), c3),         # partial pooled sums
                pl.BlockSpec((C, D_pad), c2),        # fused weight
                pl.BlockSpec((1, D_pad), c2),        # fused bias
                pl.BlockSpec((1, D_pad), c2),        # gamma
                pl.BlockSpec((1, D_pad), c2),        # beta
                pl.BlockSpec((D_pad, NC_pad), c2),   # head weight
                pl.BlockSpec((1, NC_pad), c2),       # head bias
            ],
            out_specs=(pl.BlockSpec((B, NC_pad), c2),
                       pl.BlockSpec((B, D_pad), c2)),
        ),
        compiler_params=pltpu.CompilerParams(
            dimension_semantics=("arbitrary",),
            vmem_limit_bytes=vmem_limit,
        ),
    )(psum, wfT, bf, gm, bt, whT, bhp)

    return y_p[:, :NC], f_p[:, :D]


def _reference(x_nchw, params):
    # pure-JAX reference of the same math (unfused, unpadded)
    B, C, H, W = x_nchw.shape
    pooled = jnp.mean(x_nchw.reshape(B, C, H * W).astype(jnp.float32), axis=-1)
    feat = pooled @ params["wb"].T + params["bb"]
    z = feat @ params["w1"].T + params["b1"]
    mu = jnp.mean(z, axis=0, keepdims=True)
    var = jnp.mean((z - mu) ** 2, axis=0, keepdims=True)
    f = (z - mu) / jnp.sqrt(var + BN_EPS) * params["gamma"] + params["beta"]
    v = params["v"]
    w = params["g"] * v / jnp.sqrt(jnp.sum(v * v, axis=1, keepdims=True))
    y = f @ w.T + params["bh"]
    return y, f


if __name__ == "__main__":
    B, C = 2, 4
    backbone_out = 32        # backbone.out_features
    bottleneck_dim = 32      # bottleneck_dim (small stand-in for 256)
    num_classes = 8

    key = jax.random.PRNGKey(0)
    ks = jax.random.split(key, 9)

    params = {
        # backbone linear (GAP features C -> backbone_out)
        "wb": 0.1 * jax.random.normal(ks[1], (backbone_out, C), jnp.float32),
        "bb": 0.01 * jax.random.normal(ks[2], (1, backbone_out), jnp.float32),
        # bottleneck Linear
        "w1": 0.1 * jax.random.normal(ks[3], (bottleneck_dim, backbone_out), jnp.float32),
        "b1": 0.01 * jax.random.normal(ks[4], (1, bottleneck_dim), jnp.float32),
        # BatchNorm1d affine params (PyTorch init: gamma=1, beta=0)
        "gamma": jnp.ones((1, bottleneck_dim), jnp.float32),
        "beta": jnp.zeros((1, bottleneck_dim), jnp.float32),
        # weight_norm head: direction v, magnitude g, bias
        "v": 0.1 * jax.random.normal(ks[5], (num_classes, bottleneck_dim), jnp.float32),
        "g": 1.0 + 0.1 * jax.random.normal(ks[6], (num_classes, 1), jnp.float32),
        "bh": 0.01 * jax.random.normal(ks[7], (1, num_classes), jnp.float32),
    }

    # tiny target block so the small demo exercises the multi-tile streamed
    # path (128-element tiles -> 2 tiles split across the parallel group axis)
    small_target = 128 * B * C * 4

    # Case 1: HW = 256 divides the tile exactly (no tail masking).
    x1 = jax.random.normal(ks[0], (B, C, 16, 16), dtype=jnp.float32)
    y1, f1 = jax.block_until_ready(
        image_classifier_wn(x1, params, target_block_bytes=small_target))
    y1_ref, f1_ref = _reference(x1, params)
    assert y1.shape == (B, num_classes) and f1.shape == (B, bottleneck_dim)
    assert jnp.allclose(y1, y1_ref, atol=1e-4, rtol=1e-4)
    assert jnp.allclose(f1, f1_ref, atol=1e-4, rtol=1e-4)

    # Case 2: ragged spatial size (14*14 = 196) -> in-kernel lane-mask path.
    x2 = jax.random.normal(ks[8], (B, C, 14, 14), dtype=jnp.float32)
    y2, f2 = jax.block_until_ready(
        image_classifier_wn(x2, params, target_block_bytes=small_target))
    y2_ref, f2_ref = _reference(x2, params)
    assert jnp.allclose(y2, y2_ref, atol=1e-4, rtol=1e-4)
    assert jnp.allclose(f2, f2_ref, atol=1e-4, rtol=1e-4)

    print("KERNEL_OK")
</pallas_src>

<mosaic_0001>
module attributes {stable_mosaic.version = 11 : i64} {
  func.func @_gap_kernel(%arg0: i32, %arg1: i32, %arg2: memref<2x4x128xf32, #tpu.memory_space<vmem>>, %arg3: memref<1x2x4xf32, #tpu.memory_space<vmem>>, %arg4: memref<2x4x128xf32, #tpu.memory_space<vmem>>) attributes {dimension_semantics = [#tpu.dimension_semantics<parallel>, #tpu.dimension_semantics<arbitrary>], iteration_bounds = array<i64: 2, 1>, scalar_prefetch = 0 : i64, scratch_operands = 1 : i64, tpu.core_type = #tpu.core_type<tc>, window_params = [{transform_indices = @transform_0, window_bounds = array<i64: 2, 4, 128>}, {transform_indices = @transform_1, window_bounds = array<i64: 1, 2, 4>}]} {
    %c0_i32 = arith.constant 0 : i32
    %0 = arith.cmpi eq, %arg1, %c0_i32 : i32
    %1 = arith.extui %0 : i1 to i32
    %c0_i32_0 = arith.constant 0 : i32
    %2 = arith.cmpi ne, %1, %c0_i32_0 : i32
    scf.if %2 {
      %cst = arith.constant 0.000000e+00 : f32
      %10 = vector.broadcast %cst : f32 to vector<2x4x128xf32>
      %c0_11 = arith.constant 0 : index
      %c0_12 = arith.constant 0 : index
      %c0_13 = arith.constant 0 : index
      %11 = vector.load %arg4[%c0_11, %c0_12, %c0_13] : memref<2x4x128xf32, #tpu.memory_space<vmem>>, vector<2x4x128xf32>
      tpu.vector_store %arg4[%c0_11, %c0_12, %c0_13], %10 {strides = array<i32>} : memref<2x4x128xf32, #tpu.memory_space<vmem>>, vector<2x4x128xf32>,
    } else {
    }
    %c0 = arith.constant 0 : index
    %c0_1 = arith.constant 0 : index
    %c0_2 = arith.constant 0 : index
    %3 = vector.load %arg2[%c0, %c0_1, %c0_2] : memref<2x4x128xf32, #tpu.memory_space<vmem>>, vector<2x4x128xf32>
    %c0_3 = arith.constant 0 : index
    %c0_4 = arith.constant 0 : index
    %c0_5 = arith.constant 0 : index
    %4 = vector.load %arg4[%c0_3, %c0_4, %c0_5] : memref<2x4x128xf32, #tpu.memory_space<vmem>>, vector<2x4x128xf32>
    %5 = arith.addf %4, %3 : vector<2x4x128xf32>
    %c0_6 = arith.constant 0 : index
    %c0_7 = arith.constant 0 : index
    %c0_8 = arith.constant 0 : index
    %6 = vector.load %arg4[%c0_6, %c0_7, %c0_8] : memref<2x4x128xf32, #tpu.memory_space<vmem>>, vector<2x4x128xf32>
    tpu.vector_store %arg4[%c0_6, %c0_7, %c0_8], %5 {strides = array<i32>} : memref<2x4x128xf32, #tpu.memory_space<vmem>>, vector<2x4x128xf32>,
    %c0_i32_9 = arith.constant 0 : i32
    %7 = arith.cmpi eq, %arg1, %c0_i32_9 : i32
    %8 = arith.extui %7 : i1 to i32
    %c0_i32_10 = arith.constant 0 : i32
    %9 = arith.cmpi ne, %8, %c0_i32_10 : i32
    scf.if %9 {
      %c0_11 = arith.constant 0 : index
      %c0_12 = arith.constant 0 : index
      %c0_13 = arith.constant 0 : index
      %10 = vector.load %arg4[%c0_11, %c0_12, %c0_13] : memref<2x4x128xf32, #tpu.memory_space<vmem>>, vector<2x4x128xf32>
      %cst = arith.constant dense<0.000000e+00> : vector<2x4xf32>
      %11 = vector.multi_reduction <add>, %10, %cst [2] : vector<2x4x128xf32> to vector<2x4xf32>
      %12 = vector.shape_cast %11 : vector<2x4xf32> to vector<1x2x4xf32>
      %c0_14 = arith.constant 0 : index
      %c0_15 = arith.constant 0 : index
      %c0_16 = arith.constant 0 : index
      %13 = vector.load %arg3[%c0_14, %c0_15, %c0_16] : memref<1x2x4xf32, #tpu.memory_space<vmem>>, vector<1x2x4xf32>
      tpu.vector_store %arg3[%c0_14, %c0_15, %c0_16], %12 {strides = array<i32>} : memref<1x2x4xf32, #tpu.memory_space<vmem>>, vector<1x2x4xf32>,
    } else {
    }
    return
  }
  func.func @transform_0(%arg0: i32, %arg1: i32) -> (i32, i32, i32) {
    %c1_i32 = arith.constant 1 : i32
    %0 = arith.muli %arg0, %c1_i32 : i32
    %1 = arith.addi %0, %arg1 : i32
    %c1_i32_0 = arith.constant 1 : i32
    %2 = arith.minsi %1, %c1_i32_0 : i32
    %c0_i32 = arith.constant 0 : i32
    %c0_i32_1 = arith.constant 0 : i32
    %c0_i32_2 = arith.constant 0 : i32
    return %c0_i32, %c0_i32_1, %2 : i32, i32, i32
  }
  func.func @transform_1(%arg0: i32, %arg1: i32) -> (i32, i32, i32) {
    %c0_i32 = arith.constant 0 : i32
    %c0_i32_0 = arith.constant 0 : i32
    %c0_i32_1 = arith.constant 0 : i32
    return %arg0, %c0_i32, %c0_i32_0 : i32, i32, i32
  }
}

</mosaic_0001>

<bundles_post_ra>
// kernel: tpu_custom_call.1
= control target key start
LH: loop header
LB: loop body
LE: loop exit
PB: predicated region body
PF: predicated region fallthrough
CT: control target
= control target key end

     0   :  { %6 = vsyncpa [#allocation4], 0  ;;  %s716_s0 = inlined_call_operand.hbm [shape: f32[2,4,256], index: 0, kind: input, shape index: {}]   ;;  %s717_s1 = inlined_call_operand.hbm [shape: f32[2,2,4], index: 1, kind: output, shape index: {}]  }
   0x1   :  { %8 = vsyncpa [#allocation4 + $0x1], 0 }
   0x2   :  { %9 = vsyncpa [#allocation5], 0 }
   0x3   :  { %11 = vsyncpa [#allocation5 + $0x1], 0  ;;  %s546_s6 = smov 0   ;;  %s548_s7 = smov 0  }
   0x4   :  { %s550_s8 = smov 0   ;;  %s552_s9 = smov 0  }
   0x5   :  { %s554_s10 = smov 0   ;;  %s556_s11 = smov 0  }
   0x6   :  { %s558_s12 = smov 0   ;;  %s560_s13 = smov 0  }
   0x7   :  { %s562_s14 = smov 0  }
   0x8 LB: > { %s293_s15 = sadd.s32 4294967295, %s528_s14   ;;  %s294_s16 = sadd.s32 4294967294, %s528_s14   ;;  %s528_s14 = sphi %s562_s14, %s17_s14   ;;  %s524_s13 = sphi %s560_s13, %s731_s13   ;;  %s520_s12 = sphi %s558_s12, %s730_s12   ;;  %s516_s11 = sphi %s556_s11, %s729_s11   ;;  %s512_s10 = sphi %s554_s10, %s728_s10   ;;  %s508_s9 = sphi %s552_s9, %s727_s9   ;;  %s504_s8 = sphi %s550_s8, %s726_s8   ;;  %s500_s7 = sphi %s548_s7, %s725_s7   ;;  %s496_s6 = sphi %s546_s6, %s724_s6  }
   0x9   : > { %s29_s17 = sadd.s32 1, %s524_s13  ;;  %p34_p0 = scmp.lt.s32.totalorder %s524_s13, 1 }
   0xa   : > { %p31_p1 = scmp.ge.s32.totalorder %s29_s17, 2  ;;  %s42_s18 = sadd.s32 1, %s516_s11 }
   0xb   : > { %s595_s19 = scalar_select %p34_p0, %s524_s13, 1 }
   0xc   : > { %s733_s17 = smov (%p31_p1, %s29_s17), 0  ;;  %p49_p2 = scmp.ne.s32.totalorder %s516_s11, %s512_s10 }
   0xd   : > { %p50_p3 = scmp.eq.s32.totalorder %s528_s14, 0  ;;  %p37_p4 = scmp.lt.s32.totalorder %s733_s17, 1 }
   0xe   : > { %p55_p5 = scmp.ne.s32.totalorder %s512_s10, %s508_s9  ;;  %p56_p7 = scmp.eq.s32.totalorder %s293_s15, 0 }
   0xf   : > { %p604_p6 = por %p50_p3, %p49_p2  ;;  %s65_s23 = ssub.s32 %s524_s13, %s733_s17 }
  0x10   : > { %s38_s21 = scalar_select %p37_p4, %s733_s17, 1 }
  0x11   : > { %p609_p8 = por %p56_p7, %p55_p5  ;;  %p66_p9 = scmp.eq.s32.totalorder %s65_s23, 0 }
  0x12   : > { %s39_s24 = ssub.s32 %s595_s19, %s38_s21  ;;  %s68_s25 = sadd.s32 1, %s504_s8 }
  0x13   : > { %p40_p10 = scmp.eq.s32.totalorder %s39_s24, 0  ;;  %p78_p11 = scmp.ne.s32.totalorder %s504_s8, %s500_s7 }
  0x14   : > { %s618_s26 = scalar_select %p66_p9, %s504_s8, %s68_s25  }
  0x15   : > { %s621_s27 = scalar_select %p40_p10, %s516_s11, %s42_s18  }
  0x16   : > { %p79_p12 = scmp.eq.s32.totalorder %s293_s15, 1  ;;  %p84_p13 = scmp.ne.s32.totalorder %s500_s7, %s496_s6 }
  0x17   : > { %p85_p0 = scmp.eq.s32.totalorder %s294_s16, 1  ;;  %p318_p4 = scmp.lt.s32.totalorder %s528_s14, 2 }
  0x18   : > { %p627_p1 = por %p79_p12, %p78_p11  ;;  %s105_s30 = sand.u32 1, %s516_s11  }
  0x19   : > { %p632_p3 = por %p85_p0, %p84_p13  ;;  %s298_s2 = sshll.u32 %s595_s19, 6 }
  0x1a   : > { %s297_s3 = sshll.u32 %s105_s30, 3  ;;  %s117_s9 = scalar_lea.hbm %s716_s0, %s298_s2 }
  0x1b   : > { %s109_s15 = scalar_lea.vmem [#allocation3], %s297_s3  ;;  %p644_p5 = pnand %p318_p4, %p604_p6 }
  0x1c   : > { %s118_s18 = sshll.u32 %s109_s15, 4  ;;  %p299_p7 = scmp.ge.s32.totalorder %s528_s14, 1  ;;  %s119_s18 = int_to_ptr.vmem [resolvable:$true] %s118_s18 }
  0x1d   : > { %s106_s21 = scalar_lea.sflag [#allocation4], %s105_s30  ;;  %p398_p9 = pneg %p644_p5 }
  0x1e   : > { %s409_s23 = scalar_lea.vmem %s119_s18, 128  ;;  %s530_s19 = smov [#allocation3]  }
  0x1f   : > { %p410_p10 = scmp.ne.s32.totalorder %s119_s18, %s409_s23  ;;  %s414_s24 = sshll.u32 %s530_s19, 4  ;;  %s415_s24 = int_to_ptr.vmem [resolvable:$false] %s414_s24 }
  0x20   : > { %s416_s25 = scalar_lea.vmem %s415_s24, 256  ;;  %p417_p13 = scmp.lt.s32.totalorder %s119_s18, %s415_s24 }
  0x21   : > { %p412_p11 = pnand %p410_p10, %p398_p9  ;;  %p418_p0 = scmp.lt.s32.totalorder %s416_s25, %s409_s23 }
  0x23   : > { %p413_p12 = pneg %p412_p11  ;;  %p419_p6 = por %p418_p0, %p417_p13 }
  0x25   : > { %p420_p4 = pnand %p419_p6, %p413_p12 }
  0x27   : > { %423 = shalt.err (!%p420_p4)
}
  0x28   : > { %s531_s20 = smov 128   ;;  %s532_s30 = smov 64  }
  0x29   : > { %s533_s2 = smov 4   ;;  %p126_p2 = scmp.lt.s32.totalorder %s528_s14, 3 }
  0x2a   : > { %313 = dma.hbm_to_vmem [thread:$0]  (!%p644_p5), %s117_s9, 128, %s119_s18, %s106_s21, %s531_s20, %s532_s30, %s533_s2  }
  0x2b   : > { %p127_p9 = pnand %p299_p7, %p126_p2 }
  0x2c   : > { %s132_s3 = sand.u32 (!%p127_p9), 1, %s512_s10  }
  0x2d   : > { %130 = sbr.rel (%p127_p9) target bundleno = 229 (0xe5), region = 24  ;;  %s300_s4 = sshll.u32 (!%p127_p9), %s132_s3, 3 }
  0x2e   : > { %s133_s5 = scalar_lea.sflag (!%p127_p9), [#allocation4], %s132_s3  ;;  %s136_s15 = scalar_lea.vmem (!%p127_p9), [#allocation3], %s300_s4 }
  0x32   : > { %487 = dma.done.wait (%p609_p8), %s133_s5, 128  }
  0x33   : > { %489 = vsyncadd (%p609_p8), %s133_s5, 4294967168  ;;  %v534_v0 = vmov 0.0   ;;  %v164_v1 = vld [vmem:[%s136_s15] sm:$0xf]  ;;  %v165_v2 = vld [vmem:[%s136_s15 + $0x4] sm:$0xf]  ;;  %v186_v11 = vlaneseq }
  0x34   : > { %162 = vst [vmem:[#allocation2] sm:$0xf] %v534_v0  ;;  %163 = vst [vmem:[#allocation2 + $0x4] sm:$0xf] %v534_v0  ;;  %vm177_vm0 = vcmask 1043456   ;;  %s152_s22 = sand.u32 1, %s500_s7  }
  0x35   : > { %v187_v12 = vand.u32 127, %v186_v11  ;;  %v189_v13 = vshrl.u32 %v186_v11, 7  ;;  %s301_s9 = sshll.u32 %s152_s22, 1  ;;  %s303_s18 = sshll.u32 %s520_s12, 5  ;;  %vm196_vm1 = vcmask 1041409   ;;  %vm199_vm2 = vcmask 25600  }
  0x36   : > { %s154_s16 = scalar_lea.vmem [#allocation6], %s301_s9  ;;  %s666_s24 = scalar_lea.hbm %s717_s1, %s303_s18 }
  0x37   : > { %v190_v15 = vsub.s32 %v187_v12, %v189_v13  ;;  %s215_s21 = sshll.u32 %s154_s16, 4  ;;  %s202_s25 = scalar_lea.sflag [#allocation5], %s152_s22  ;;  %s216_s21 = int_to_ptr.vmem [resolvable:$true] %s215_s21 }
  0x38   : > { %s424_s20 = scalar_lea.vmem %s216_s21, 32  ;;  %s535_s12 = smov [#allocation6]  }
  0x39   : > { %p425_p8 = scmp.ne.s32.totalorder %s216_s21, %s424_s20  ;;  %s428_s30 = sshll.u32 %s535_s12, 4  ;;  %s429_s30 = int_to_ptr.vmem [resolvable:$false] %s428_s30 }
  0x3a   : > { %s430_s2 = scalar_lea.vmem %s429_s30, 64  ;;  %p431_p7 = scmp.lt.s32.totalorder %s216_s21, %s429_s30 }
  0x3b   : > { %v166_v3 = vld [vmem:[#allocation2] sm:$0xf]  ;;  %v167_v4 = vld [vmem:[#allocation2 + $0x4] sm:$0xf]  ;;  %p426_p2 = pnand %p425_p8, %p627_p1  ;;  %p432_p10 = scmp.lt.s32.totalorder %s430_s2, %s424_s20 }
  0x3c   : > { %v168_v5 = vadd.f32 %v166_v3, %v164_v1  ;;  %v169_v6 = vadd.f32 %v167_v4, %v165_v2 }
  0x3d   : > { %p427_p5 = pneg %p426_p2  ;;  %p433_p11 = por %p432_p10, %p431_p7 }
  0x3e   : > { %170 = vst [vmem:[#allocation2] sm:$0xf] %v168_v5  ;;  %171 = vst [vmem:[#allocation2 + $0x4] sm:$0xf] %v169_v6 }
  0x3f   : > { %p434_p12 = pnand %p433_p11, %p427_p5 }
  0x45   : > { %v175_v7 = vld [vmem:[#allocation2] sm:$0xf]  ;;  %v176_v8 = vld [vmem:[#allocation2 + $0x4] sm:$0xf] }
  0x46   : > { %v178_v9 = vsel %vm177_vm0, %v175_v7, 0.0  ;;  %v181_v10 = vsel %vm177_vm0, %v176_v8, 0.0 }
  0x47   : > { %179 = vadd.xlane.f32.xlu0 %v178_v9 }
  0x4b   : > { %182 = vadd.xlane.f32.xlu0 %v181_v10 }
  0xd0   : > { %v180_v14 = vpop.xlane.xlu0 %179 }
  0xd1   : > { %v191_v17 = vrot.slane %v180_v14, %v190_v15 }
  0xd4   : > { %v183_v16 = vpop.xlane.xlu0 %182 }
  0xd5   : > { %v195_v18 = vrot.slane %v183_v16, %v190_v15 }
  0xd7   : > { %v197_v19 = vsel %vm196_vm1, %v195_v18, %v191_v17 }
  0xd8   : > { %200 = vst.msk [vmem:[%s154_s16] sm:$0x3] %vm199_vm2, %v197_v19 }
  0xd9   : > { %437 = shalt.err (!%p434_p12)
}
  0xda   : > { %s438_s3 = scalar_lea.hbm %s666_s24, 32  ;;  %s442_s15 = scalar_lea.hbm %s717_s1, 64 }
  0xdb   : > { %p439_p13 = scmp.ne.s32.totalorder %s666_s24, %s438_s3  ;;  %p443_p4 = scmp.lt.s32.totalorder %s666_s24, %s717_s1 }
  0xdc   : > { %p444_p9 = scmp.lt.s32.totalorder %s442_s15, %s438_s3 }
  0xdd   : > { %p440_p0 = pnand %p439_p13, %p627_p1 }
  0xde   : > { %p445_p8 = por %p444_p9, %p443_p4 }
  0xdf   : > { %p441_p6 = pneg %p440_p0 }
  0xe1   : > { %p446_p2 = pnand %p445_p8, %p441_p6 }
  0xe3   : > { %449 = shalt.err (!%p446_p2)
}
  0xe4   : > { %308 = dma.vmem_to_hbm [thread:$0]  (%p627_p1), %s216_s21, 32, %s666_s24, %s202_s25  }
  0xe5 PF: > { %s227_s18 = sand.u32 1, %s496_s6   ;;  %p723_p5 = scmp.ge.s32.totalorder %s528_s14, 2 }
  0xe6   : > { %s228_s16 = scalar_lea.sflag [#allocation5], %s227_s18 }
  0xe7   : > { %p315_p7 = pnand %p723_p5, %p632_p3 }
  0xe9   : > { %p316_p10 = pneg %p315_p7 }
  0xeb   : > { %491 = dma.done.wait (%p316_p10), %s228_s16, 32  }
  0xec   : > { %493 = vsyncadd (%p316_p10), %s228_s16, 4294967264  ;;  %s17_s14 = sadd.s32 1, %s528_s14   ;;  %s724_s6 = smov %s500_s7 }
  0xed   : > { %p14_p11 = scmp.ge.s32.totalorder %s17_s14, 4   ;;  %s725_s7 = smov %s504_s8 }
  0xee   : > { %s726_s8 = smov %s618_s26  ;;  %s727_s9 = smov %s512_s10 }
  0xef   : > { %s728_s10 = smov %s516_s11  ;;  %s729_s11 = smov %s621_s27 }
  0xf0   : > { %s730_s12 = smov %s524_s13  ;;  %s731_s13 = smov %s733_s17 }
  0xf1   :  { %16 = sbr.rel (!%p14_p11) target bundleno = 8 (0x8), region = 77 }
  0xf6   :  { %233 = vsyncpa [#allocation4], 1 }
  0xf7   :  { %235 = vsyncpa [#allocation4 + $0x1], 1 }
  0xf8   :  { %236 = vsyncpa [#allocation5], 1 }
  0xf9   :  { %238 = vsyncpa [#allocation5 + $0x1], 1 }

</bundles_post_ra>
